<compile_context>
chip_gen: v5e
topology: v5e:2x2
jax: 0.10.0
libtpu: 0.0.40
codegen_flags: <defaults>
</compile_context>

<pallas_src>
import functools

import numpy as np

import jax
import jax.numpy as jnp
from jax.experimental import pallas as pl
from jax.experimental.pallas import tpu as pltpu


# ----------------------------- Pallas kernel --------------------------------


def fused_ensemble_kernel(patches_ref, wc_ref, bc_ref, pool_ref, lw_ref,
                          lb_ref, out_ref):
    """Fused ensemble forward (single invocation, everything resident in VMEM).

    patches_ref: (M, K)      im2col rows, M = N*H*W, K = C_in*9
    wc_ref:      (K, C)      full-width conv weight (reshaped, transposed)
    bc_ref:      (1, C)      full-width conv bias
    pool_ref:    (N, M)      block-diagonal global-avg-pool matrix (1/P entries)
    lw_ref:      (C, 128)    ensemble-combined classifier weight, lane-padded
    lb_ref:      (1, 128)    ensemble-combined classifier bias, lane-padded
    out_ref:     (N, 128)    lane-dense padded logits
    """
    # Conv as one MXU matmul, bias + ReLU on the VPU.
    hidden = jnp.dot(patches_ref[...], wc_ref[...],
                     preferred_element_type=jnp.float32)          # (M, C)
    hidden = jnp.maximum(hidden + bc_ref[...], 0.0)

    # Global average pool per batch element as a second MXU matmul.
    feas = jnp.dot(pool_ref[...], hidden,
                   preferred_element_type=jnp.float32)            # (N, C)

    # Pre-combined ensemble classifier -> lane-dense padded logits.
    out_ref[...] = jnp.dot(feas, lw_ref[...],
                           preferred_element_type=jnp.float32) + lb_ref[...]


# ------------------------------ JAX wrapper ----------------------------------


def extract_patches_3x3_same(x_nchw):
    """NCHW -> (N*H*W, C_in*9) patch rows for a 3x3 SAME convolution.

    Feature ordering is channel-major / filter-position-minor, matching
    conv_w.reshape(C_out, C_in*9).
    """
    n, cin, h, w = x_nchw.shape
    p = jax.lax.conv_general_dilated_patches(
        x_nchw, filter_shape=(3, 3), window_strides=(1, 1), padding="SAME",
        dimension_numbers=("NCHW", "OIHW", "NCHW"),
        precision=jax.lax.Precision.HIGHEST)                      # (N, Cin*9, H, W)
    p = jnp.transpose(p, (0, 2, 3, 1))                            # (N, H, W, Cin*9)
    return p.reshape(n * h * w, cin * 9)


def ensemble_group_subnet_forward(x_nchw, params,
                                  subnet_ratios=(0.125, 0.25),
                                  shift_idxs=(0, 0),
                                  weights=None):
    """EnsembleGroupSubnet.forward(x, subnet_reduction='mean')."""
    conv_w, conv_b, lin_w, lin_b = params
    c_full = conv_w.shape[0]
    nc = lin_w.shape[0]
    n, cin, h, w = x_nchw.shape
    p_spatial = h * w
    m_rows = n * p_spatial
    nc_pad = 128                                   # lane-dense logits output

    # Normalized ensemble weights (weights=None -> plain mean, torch.mean).
    s_num = len(subnet_ratios)
    if weights is None:
        w_norm = [1.0 / s_num] * s_num
    else:
        tot = float(sum(weights))
        w_norm = [float(v) / tot for v in weights]

    # Static per-channel ensemble multiplier (which subnets see channel c).
    mult = np.zeros((c_full,), np.float32)
    for ws, r, s in zip(w_norm, subnet_ratios, shift_idxs):
        c = int(r * c_full)                        # floor: slimmable-ops convention
        start = s * c
        assert 0 <= start and start + c <= c_full, (
            f"subnet slice out of bounds: ratio={r}, shift={s}, C={c_full}")
        mult[start:start + c] += ws

    # Host-side weight prep ("switch_slim_mode" folded into static packing).
    wc = conv_w.reshape(c_full, cin * 9).T                         # (K, C)
    bc = conv_b.reshape(1, c_full)                                 # (1, C)
    lw_ens = lin_w.T * jnp.asarray(mult)[:, None]                  # (C, NC)
    lw_pad = jnp.zeros((c_full, nc_pad), jnp.float32).at[:, :nc].set(lw_ens)
    lb_ens = lin_b * float(sum(w_norm))                            # == lin_b
    lb_pad = jnp.zeros((1, nc_pad), jnp.float32).at[:, :nc].set(lb_ens[None, :])

    # Block-diagonal pooling matrix (1/P entries) — built once at trace time.
    pool_np = np.zeros((n, m_rows), np.float32)
    for i in range(n):
        pool_np[i, i * p_spatial:(i + 1) * p_spatial] = 1.0 / p_spatial
    pool = jnp.asarray(pool_np)

    patches = extract_patches_3x3_same(x_nchw)                     # (M, K)

    logits_pad = pl.pallas_call(
        fused_ensemble_kernel,
        out_shape=jax.ShapeDtypeStruct((n, nc_pad), jnp.float32),
        in_specs=[pl.BlockSpec(memory_space=pltpu.MemorySpace.VMEM)
                  for _ in range(6)],
        out_specs=pl.BlockSpec(memory_space=pltpu.MemorySpace.VMEM),
    )(patches, wc, bc, pool, lw_pad, lb_pad)

    return logits_pad[:, :nc]


# ------------------------------- reference -----------------------------------


def reference_forward(x_nchw, params, subnet_ratios, shift_idxs):
    """Pure-JAX reference (lax conv), mirroring the PyTorch semantics."""
    conv_w, conv_b, lin_w, lin_b = params
    c_full = conv_w.shape[0]
    logits_list = []
    for r, s in zip(subnet_ratios, shift_idxs):
        c = int(r * c_full)
        st = s * c
        y = jax.lax.conv_general_dilated(
            x_nchw, conv_w[st:st + c], (1, 1), "SAME",
            dimension_numbers=("NCHW", "OIHW", "NCHW"))
        y = jnp.maximum(y + conv_b[st:st + c][None, :, None, None], 0.0)
        feas = jnp.mean(y, axis=(2, 3))
        logits_list.append(feas @ lin_w[:, st:st + c].T + lin_b)
    return jnp.mean(jnp.stack(logits_list, axis=-1), axis=-1)


# --------------------------------- main ---------------------------------------


if __name__ == "__main__":
    C_IN, C_FULL, NUM_CLASSES = 4, 32, 10
    N, H, W = 2, 16, 16
    SUBNET_RATIOS = (0.125, 0.25)
    SHIFT_IDXS = (0, 0)

    key = jax.random.PRNGKey(0)
    k1, k2, k3, k4, k5 = jax.random.split(key, 5)
    conv_w = jax.random.normal(k1, (C_FULL, C_IN, 3, 3), jnp.float32) * 0.1
    conv_b = jax.random.normal(k2, (C_FULL,), jnp.float32) * 0.1
    lin_w = jax.random.normal(k3, (NUM_CLASSES, C_FULL), jnp.float32) * 0.1
    lin_b = jax.random.normal(k4, (NUM_CLASSES,), jnp.float32) * 0.1
    x = jax.random.normal(k5, (N, C_IN, H, W), jnp.float32)        # NCHW input

    params = (conv_w, conv_b, lin_w, lin_b)

    fwd = functools.partial(ensemble_group_subnet_forward,
                            subnet_ratios=SUBNET_RATIOS,
                            shift_idxs=SHIFT_IDXS,
                            weights=None)
    out = jax.jit(fwd)(x, params)
    out = jax.block_until_ready(out)

    ref = reference_forward(x, params, SUBNET_RATIOS, SHIFT_IDXS)
    assert out.shape == (N, NUM_CLASSES), out.shape
    assert jnp.allclose(out, ref, rtol=1e-4, atol=1e-5), (
        f"max abs err = {jnp.max(jnp.abs(out - ref))}")

    print("KERNEL_OK")
</pallas_src>

<mosaic_0001>
module attributes {stable_mosaic.version = 11 : i64} {
  func.func @fused_ensemble_kernel(%arg0: memref<512x36xf32, #tpu.memory_space<vmem>>, %arg1: memref<36x32xf32, #tpu.memory_space<vmem>>, %arg2: memref<1x32xf32, #tpu.memory_space<vmem>>, %arg3: memref<2x512xf32, #tpu.memory_space<vmem>>, %arg4: memref<32x128xf32, #tpu.memory_space<vmem>>, %arg5: memref<1x128xf32, #tpu.memory_space<vmem>>, %arg6: memref<2x128xf32, #tpu.memory_space<vmem>>) attributes {dimension_semantics = [], scalar_prefetch = 0 : i64, scratch_operands = 0 : i64, tpu.core_type = #tpu.core_type<tc>} {
    %c0 = arith.constant 0 : index
    %c0_0 = arith.constant 0 : index
    %0 = vector.load %arg0[%c0, %c0_0] : memref<512x36xf32, #tpu.memory_space<vmem>>, vector<512x36xf32>
    %c0_1 = arith.constant 0 : index
    %c0_2 = arith.constant 0 : index
    %1 = vector.load %arg1[%c0_1, %c0_2] : memref<36x32xf32, #tpu.memory_space<vmem>>, vector<36x32xf32>
    %cst = arith.constant dense<0.000000e+00> : vector<512x32xf32>
    %2 = tpu.matmul %0, %1, %cst {dimension_numbers = #tpu.dot_dimension_numbers<[1], [0], [0], [1], [0, 0, 1, 1], [], []>} : vector<512x36xf32>, vector<36x32xf32>, vector<512x32xf32> -> vector<512x32xf32>
    %c0_3 = arith.constant 0 : index
    %c0_4 = arith.constant 0 : index
    %3 = vector.load %arg2[%c0_3, %c0_4] : memref<1x32xf32, #tpu.memory_space<vmem>>, vector<1x32xf32>
    %4 = vector.broadcast %3 : vector<1x32xf32> to vector<512x32xf32>
    %5 = arith.addf %2, %4 : vector<512x32xf32>
    %cst_5 = arith.constant 0.000000e+00 : f32
    %6 = vector.broadcast %cst_5 : f32 to vector<512x32xf32>
    %7 = arith.maximumf %5, %6 : vector<512x32xf32>
    %c0_6 = arith.constant 0 : index
    %c0_7 = arith.constant 0 : index
    %8 = vector.load %arg3[%c0_6, %c0_7] : memref<2x512xf32, #tpu.memory_space<vmem>>, vector<2x512xf32>
    %cst_8 = arith.constant dense<0.000000e+00> : vector<2x32xf32>
    %9 = tpu.matmul %8, %7, %cst_8 {dimension_numbers = #tpu.dot_dimension_numbers<[1], [0], [0], [1], [0, 0, 1, 1], [], []>} : vector<2x512xf32>, vector<512x32xf32>, vector<2x32xf32> -> vector<2x32xf32>
    %c0_9 = arith.constant 0 : index
    %c0_10 = arith.constant 0 : index
    %10 = vector.load %arg4[%c0_9, %c0_10] : memref<32x128xf32, #tpu.memory_space<vmem>>, vector<32x128xf32>
    %cst_11 = arith.constant dense<0.000000e+00> : vector<2x128xf32>
    %11 = tpu.matmul %9, %10, %cst_11 {dimension_numbers = #tpu.dot_dimension_numbers<[1], [0], [0], [1], [0, 0, 1, 1], [], []>} : vector<2x32xf32>, vector<32x128xf32>, vector<2x128xf32> -> vector<2x128xf32>
    %c0_12 = arith.constant 0 : index
    %c0_13 = arith.constant 0 : index
    %12 = vector.load %arg5[%c0_12, %c0_13] : memref<1x128xf32, #tpu.memory_space<vmem>>, vector<1x128xf32>
    %13 = vector.broadcast %12 : vector<1x128xf32> to vector<2x128xf32>
    %14 = arith.addf %11, %13 : vector<2x128xf32>
    %c0_14 = arith.constant 0 : index
    %c0_15 = arith.constant 0 : index
    %15 = vector.load %arg6[%c0_14, %c0_15] : memref<2x128xf32, #tpu.memory_space<vmem>>, vector<2x128xf32>
    tpu.vector_store %arg6[%c0_14, %c0_15], %14 {strides = array<i32>} : memref<2x128xf32, #tpu.memory_space<vmem>>, vector<2x128xf32>,
    return
  }
}

</mosaic_0001>

<bundles_post_ra>
// kernel: ensemble_group_subnet_forward.1
= control target key start
LH: loop header
LB: loop body
LE: loop exit
PB: predicated region body
PF: predicated region fallthrough
CT: control target
= control target key end

     0   :  { %vm290_vm0 = vcmask 1043456   ;;  %vm97_vm1 = vcmask 293888   ;;  %s1322_s0 = inlined_call_operand.vmem [shape: f32[512,36], index: 0, kind: input, shape index: {}]   ;;  %s1323_s1 = inlined_call_operand.vmem [shape: f32[36,32], index: 1, kind: input, shape index: {}]   ;;  %s1324_s2 = inlined_call_operand.vmem [shape: f32[1,32], index: 2, kind: input, shape index: {}]   ;;  %s1325_s3 = inlined_call_operand.vmem [shape: f32[2,512], index: 3, kind: input, shape index: {}]   ;;  %s1326_s4 = inlined_call_operand.vmem [shape: f32[32,128], index: 4, kind: input, shape index: {}]   ;;  %s1327_s5 = inlined_call_operand.vmem [shape: f32[1,128], index: 5, kind: input, shape index: {}]   ;;  %s1328_s6 = inlined_call_operand.hbm [shape: f32[2,128], index: 6, kind: output, shape index: {}]  }
   0x1   :  { %v92_v0 = vld [vmem:[%s1323_s1 + $0x20] sm:$0xf]  ;;  %v91_v1 = vld [vmem:[%s1323_s1 + $0x18] sm:$0xff]  ;;  %v90_v2 = vld [vmem:[%s1323_s1 + $0x10] sm:$0xff] }
   0x2   :  { %707 = vmatpush.msk.msra.mxu0 %vm290_vm0, %v92_v0  ;;  %773 = vmatpush.msk.msra.mxu1 %vm290_vm0, %v92_v0  ;;  %v89_v3 = vld [vmem:[%s1323_s1 + $0x8] sm:$0xff]  ;;  %v88_v4 = vld [vmem:[%s1323_s1] sm:$0xff] }
   0x3   :  { %774 = vmatpush.msk.msra.mxu2 %vm290_vm0, %v92_v0  ;;  %775 = vmatpush.msk.msra.mxu3 %vm290_vm0, %v92_v0  ;;  %v24_v5 = vld [vmem:[%s1322_s0] sm:$0xff] }
   0x4   :  { %306 = vmatpush.msra.mxu0 %v91_v1  ;;  %776 = vmatpush.msra.mxu1 %v91_v1 }
   0x5   :  { %777 = vmatpush.msra.mxu2 %v91_v1  ;;  %778 = vmatpush.msra.mxu3 %v91_v1 }
   0x6   :  { %307 = vmatpush.msra.mxu0 %v90_v2  ;;  %779 = vmatpush.msra.mxu1 %v90_v2 }
   0x7   :  { %780 = vmatpush.msra.mxu2 %v90_v2  ;;  %781 = vmatpush.msra.mxu3 %v90_v2 }
   0x8   :  { %308 = vmatpush.msra.mxu0 %v89_v3  ;;  %782 = vmatpush.msra.mxu1 %v89_v3 }
   0x9   :  { %11 = vsyncpa [#allocation3], 0  ;;  %783 = vmatpush.msra.mxu2 %v89_v3  ;;  %v44_v6 = vld [vmem:[%s1322_s0 + $0xa0] sm:$0xff]  ;;  %v54_v7 = vld [vmem:[%s1322_s0 + $0xf0] sm:$0xff]  ;;  %784 = vmatpush.msra.mxu3 %v89_v3  ;;  %vm666_vm2 = vcmask 261120   ;;  %s817_s20 = smov [#allocation2]  }
   0xa   :  { %309 = vmatpush.msra.mxu0 %v88_v4  ;;  %785 = vmatpush.msra.mxu1 %v88_v4  ;;  %v70_v8 = vld [vmem:[%s1322_s0 + $0x170] sm:$0xff]  ;;  %v25_v9 = vld [vmem:[%s1322_s0 + $0x8] sm:$0xff]  ;;  %v55_v11 = vld [vmem:[%s1322_s0 + $0xf8] sm:$0xff]  ;;  %s696_s21 = sshll.u32 %s817_s20, 4  ;;  %s697_s21 = int_to_ptr.vmem [resolvable:$true] %s696_s21 }
   0xb   :  { %786 = vmatpush.msra.mxu2 %v88_v4  ;;  %708 = vmatmul.msk.f32.vlgmr.msra.gmra.mxu0 %vm97_vm1, %v24_v5  ;;  %v45_v10 = vld [vmem:[%s1322_s0 + $0xa8] sm:$0xff]  ;;  %v71_v12 = vld [vmem:[%s1322_s0 + $0x178] sm:$0xff]  ;;  %v26_v13 = vld [vmem:[%s1322_s0 + $0x10] sm:$0xff] }
   0xc   :  { %728 = vmatmul.msk.f32.vlgmr.msra.gmra.mxu1 %vm97_vm1, %v44_v6  ;;  %738 = vmatmul.msk.f32.vlgmr.msra.gmra.mxu2 %vm97_vm1, %v54_v7  ;;  %v46_v14 = vld [vmem:[%s1322_s0 + $0xb0] sm:$0xff]  ;;  %v56_v15 = vld [vmem:[%s1322_s0 + $0x100] sm:$0xff]  ;;  %v27_v17 = vld [vmem:[%s1322_s0 + $0x18] sm:$0xff] }
   0xd   :  { %787 = vmatpush.msra.mxu3 %v88_v4  ;;  %v72_v16 = vld [vmem:[%s1322_s0 + $0x180] sm:$0xff]  ;;  %v47_v18 = vld [vmem:[%s1322_s0 + $0xb8] sm:$0xff]  ;;  %v57_v19 = vld [vmem:[%s1322_s0 + $0x108] sm:$0xff] }
   0xe   :  { %754 = vmatmul.msk.f32.vlgmr.msra.gmra.mxu3 %vm97_vm1, %v70_v8  ;;  %v73_v20 = vld [vmem:[%s1322_s0 + $0x188] sm:$0xff]  ;;  %v28_v21 = vld [vmem:[%s1322_s0 + $0x20] sm:$0xff]  ;;  %v58_v23 = vld [vmem:[%s1322_s0 + $0x110] sm:$0xff] }
   0xf   :  { %v48_v22 = vld [vmem:[%s1322_s0 + $0xc0] sm:$0xff]  ;;  %v74_v24 = vld [vmem:[%s1322_s0 + $0x190] sm:$0xff]  ;;  %v29_v25 = vld [vmem:[%s1322_s0 + $0x28] sm:$0xff] }
  0x10   :  { %v49_v26 = vld [vmem:[%s1322_s0 + $0xc8] sm:$0xff]  ;;  %v59_v27 = vld [vmem:[%s1322_s0 + $0x118] sm:$0xff]  ;;  %v30_v29 = vld [vmem:[%s1322_s0 + $0x30] sm:$0xff] }
  0x11   :  { %v75_v28 = vld [vmem:[%s1322_s0 + $0x198] sm:$0xff]  ;;  %v50_v30 = vld [vmem:[%s1322_s0 + $0xd0] sm:$0xff]  ;;  %v60_v31 = vld [vmem:[%s1322_s0 + $0x120] sm:$0xff] }
  0x12   :  { %v76_v32 = vld [vmem:[%s1322_s0 + $0x1a0] sm:$0xff]  ;;  %v31_v33 = vld [vmem:[%s1322_s0 + $0x38] sm:$0xff]  ;;  %v61_v35 = vld [vmem:[%s1322_s0 + $0x128] sm:$0xff] }
  0x13   :  { %709 = vmatmul.msk.f32.gmra.mxu0 %vm97_vm1, %v25_v9  ;;  %v51_v34 = vld [vmem:[%s1322_s0 + $0xd8] sm:$0xff]  ;;  %v77_v36 = vld [vmem:[%s1322_s0 + $0x1a8] sm:$0xff]  ;;  %v32_v37 = vld [vmem:[%s1322_s0 + $0x40] sm:$0xff] }
  0x14   :  { %729 = vmatmul.msk.f32.gmra.mxu1 %vm97_vm1, %v45_v10  ;;  %739 = vmatmul.msk.f32.gmra.mxu2 %vm97_vm1, %v55_v11  ;;  %v52_v38 = vld [vmem:[%s1322_s0 + $0xe0] sm:$0xff]  ;;  %v62_v39 = vld [vmem:[%s1322_s0 + $0x130] sm:$0xff]  ;;  %v33_v41 = vld [vmem:[%s1322_s0 + $0x48] sm:$0xff] }
  0x15   :  { %v78_v40 = vld [vmem:[%s1322_s0 + $0x1b0] sm:$0xff]  ;;  %v53_v42 = vld [vmem:[%s1322_s0 + $0xe8] sm:$0xff]  ;;  %v63_v43 = vld [vmem:[%s1322_s0 + $0x138] sm:$0xff] }
  0x16   :  { %755 = vmatmul.msk.f32.gmra.mxu3 %vm97_vm1, %v71_v12  ;;  %v79_v44 = vld [vmem:[%s1322_s0 + $0x1b8] sm:$0xff]  ;;  %v34_v45 = vld [vmem:[%s1322_s0 + $0x50] sm:$0xff]  ;;  %v64_v46 = vld [vmem:[%s1322_s0 + $0x140] sm:$0xff] }
  0x17   :  { %v80_v47 = vld [vmem:[%s1322_s0 + $0x1c0] sm:$0xff]  ;;  %v35_v48 = vld [vmem:[%s1322_s0 + $0x58] sm:$0xff]  ;;  %v65_v49 = vld [vmem:[%s1322_s0 + $0x148] sm:$0xff] }
  0x18   :  { %v81_v50 = vld [vmem:[%s1322_s0 + $0x1c8] sm:$0xff]  ;;  %v36_v51 = vld [vmem:[%s1322_s0 + $0x60] sm:$0xff]  ;;  %v66_v52 = vld [vmem:[%s1322_s0 + $0x150] sm:$0xff] }
  0x19   :  { %v82_v53 = vld [vmem:[%s1322_s0 + $0x1d0] sm:$0xff]  ;;  %v37_v54 = vld [vmem:[%s1322_s0 + $0x68] sm:$0xff]  ;;  %v67_v55 = vld [vmem:[%s1322_s0 + $0x158] sm:$0xff] }
  0x1a   :  { %v83_v56 = vld [vmem:[%s1322_s0 + $0x1d8] sm:$0xff]  ;;  %v38_v57 = vld [vmem:[%s1322_s0 + $0x70] sm:$0xff]  ;;  %v68_v58 = vld [vmem:[%s1322_s0 + $0x160] sm:$0xff] }
  0x1b   :  { %710 = vmatmul.msk.f32.gmra.mxu0 %vm97_vm1, %v26_v13  ;;  %v84_v59 = vld [vmem:[%s1322_s0 + $0x1e0] sm:$0xff]  ;;  %v39_v60 = vld [vmem:[%s1322_s0 + $0x78] sm:$0xff]  ;;  %v69_v61 = vld [vmem:[%s1322_s0 + $0x168] sm:$0xff] }
  0x1c   :  { %730 = vmatmul.msk.f32.gmra.mxu1 %vm97_vm1, %v46_v14  ;;  %740 = vmatmul.msk.f32.gmra.mxu2 %vm97_vm1, %v56_v15  ;;  %v85_v62 = vld [vmem:[%s1322_s0 + $0x1e8] sm:$0xff]  ;;  %v40_v0 = vld [vmem:[%s1322_s0 + $0x80] sm:$0xff]  ;;  %v86_v2 = vld [vmem:[%s1322_s0 + $0x1f0] sm:$0xff] }
  0x1d   :  { %v41_v5 = vld [vmem:[%s1322_s0 + $0x88] sm:$0xff]  ;;  %v87_v8 = vld [vmem:[%s1322_s0 + $0x1f8] sm:$0xff]  ;;  %v1126_v9 = vld [vmem:[%s1324_s2] ss:$0 sm:$0xff] }
  0x1e   :  { %756 = vmatmul.msk.f32.gmra.mxu3 %vm97_vm1, %v72_v16  ;;  %v42_v15 = vld [vmem:[%s1322_s0 + $0x90] sm:$0xff] }
  0x23   :  { %711 = vmatmul.msk.f32.gmra.mxu0 %vm97_vm1, %v27_v17 }
  0x24   :  { %731 = vmatmul.msk.f32.gmra.mxu1 %vm97_vm1, %v47_v18  ;;  %741 = vmatmul.msk.f32.gmra.mxu2 %vm97_vm1, %v57_v19 }
  0x26   :  { %757 = vmatmul.msk.f32.gmra.mxu3 %vm97_vm1, %v73_v20 }
  0x2b   :  { %712 = vmatmul.msk.f32.gmra.mxu0 %vm97_vm1, %v28_v21 }
  0x2c   :  { %732 = vmatmul.msk.f32.gmra.mxu1 %vm97_vm1, %v48_v22  ;;  %742 = vmatmul.msk.f32.gmra.mxu2 %vm97_vm1, %v58_v23 }
  0x2e   :  { %758 = vmatmul.msk.f32.gmra.mxu3 %vm97_vm1, %v74_v24 }
  0x33   :  { %713 = vmatmul.msk.f32.gmra.mxu0 %vm97_vm1, %v29_v25  ;;  %v43_v25 = vld [vmem:[%s1322_s0 + $0x98] sm:$0xff] }
  0x34   :  { %733 = vmatmul.msk.f32.gmra.mxu1 %vm97_vm1, %v49_v26  ;;  %743 = vmatmul.msk.f32.gmra.mxu2 %vm97_vm1, %v59_v27 }
  0x36   :  { %759 = vmatmul.msk.f32.gmra.mxu3 %vm97_vm1, %v75_v28 }
  0x3b   :  { %714 = vmatmul.msk.f32.gmra.mxu0 %vm97_vm1, %v30_v29 }
  0x3c   :  { %734 = vmatmul.msk.f32.gmra.mxu1 %vm97_vm1, %v50_v30  ;;  %744 = vmatmul.msk.f32.gmra.mxu2 %vm97_vm1, %v60_v31 }
  0x3e   :  { %760 = vmatmul.msk.f32.gmra.mxu3 %vm97_vm1, %v76_v32 }
  0x43   :  { %715 = vmatmul.msk.f32.gmra.mxu0 %vm97_vm1, %v31_v33 }
  0x44   :  { %735 = vmatmul.msk.f32.gmra.mxu1 %vm97_vm1, %v51_v34  ;;  %745 = vmatmul.msk.f32.gmra.mxu2 %vm97_vm1, %v61_v35 }
  0x46   :  { %761 = vmatmul.msk.f32.gmra.mxu3 %vm97_vm1, %v77_v36 }
  0x4b   :  { %716 = vmatmul.msk.f32.gmra.mxu0 %vm97_vm1, %v32_v37 }
  0x4c   :  { %736 = vmatmul.msk.f32.gmra.mxu1 %vm97_vm1, %v52_v38  ;;  %746 = vmatmul.msk.f32.gmra.mxu2 %vm97_vm1, %v62_v39 }
  0x4e   :  { %762 = vmatmul.msk.f32.gmra.mxu3 %vm97_vm1, %v78_v40 }
  0x53   :  { %717 = vmatmul.msk.f32.gmra.mxu0 %vm97_vm1, %v33_v41 }
  0x54   :  { %737 = vmatmul.msk.f32.gmra.mxu1 %vm97_vm1, %v53_v42  ;;  %747 = vmatmul.msk.f32.gmra.mxu2 %vm97_vm1, %v63_v43 }
  0x56   :  { %763 = vmatmul.msk.f32.gmra.mxu3 %vm97_vm1, %v79_v44 }
  0x5b   :  { %718 = vmatmul.msk.f32.gmra.mxu0 %vm97_vm1, %v34_v45 }
  0x5c   :  { %748 = vmatmul.msk.f32.gmra.mxu2 %vm97_vm1, %v64_v46 }
  0x5e   :  { %764 = vmatmul.msk.f32.gmra.mxu3 %vm97_vm1, %v80_v47 }
  0x63   :  { %719 = vmatmul.msk.f32.gmra.mxu0 %vm97_vm1, %v35_v48 }
  0x64   :  { %749 = vmatmul.msk.f32.gmra.mxu2 %vm97_vm1, %v65_v49 }
  0x66   :  { %765 = vmatmul.msk.f32.gmra.mxu3 %vm97_vm1, %v81_v50 }
  0x6b   :  { %720 = vmatmul.msk.f32.gmra.mxu0 %vm97_vm1, %v36_v51 }
  0x6c   :  { %750 = vmatmul.msk.f32.gmra.mxu2 %vm97_vm1, %v66_v52 }
  0x6e   :  { %766 = vmatmul.msk.f32.gmra.mxu3 %vm97_vm1, %v82_v53 }
  0x73   :  { %721 = vmatmul.msk.f32.gmra.mxu0 %vm97_vm1, %v37_v54 }
  0x74   :  { %751 = vmatmul.msk.f32.gmra.mxu2 %vm97_vm1, %v67_v55 }
  0x76   :  { %767 = vmatmul.msk.f32.gmra.mxu3 %vm97_vm1, %v83_v56 }
  0x7b   :  { %722 = vmatmul.msk.f32.gmra.mxu0 %vm97_vm1, %v38_v57 }
  0x7c   :  { %752 = vmatmul.msk.f32.gmra.mxu2 %vm97_vm1, %v68_v58 }
  0x7e   :  { %768 = vmatmul.msk.f32.gmra.mxu3 %vm97_vm1, %v84_v59 }
  0x83   :  { %723 = vmatmul.msk.f32.gmra.mxu0 %vm97_vm1, %v39_v60 }
  0x84   :  { %753 = vmatmul.msk.f32.gmra.mxu2 %vm97_vm1, %v69_v61 }
  0x86   :  { %769 = vmatmul.msk.f32.gmra.mxu3 %vm97_vm1, %v85_v62 }
  0x88   :  { %v1100_v63 = vpop.f32.mrf.mxu0 }
  0x89   :  { %v1105_v1 = vpop.f32.mrf.mxu1 }
  0x8b   :  { %724 = vmatmul.msk.f32.gmra.mxu0 %vm97_vm1, %v40_v0 }
  0x8e   :  { %770 = vmatmul.msk.f32.gmra.mxu3 %vm97_vm1, %v86_v2 }
  0x8f   :  { %v401_v3 = vpop.f32.mrf.mxu2 }
  0x90   :  { %v1112_v4 = vpop.f32.mrf.mxu0  ;;  %v402_v10 = vadd.f32 %v1126_v9, %v401_v3 }
  0x91   :  { %v1117_v6 = vpop.f32.mrf.mxu1  ;;  %v449_v7 = vpop.f32.mrf.mxu3 }
  0x92   :  { %v450_v13 = vadd.f32 %v1126_v9, %v449_v7  ;;  %v533_v18 = vmax.f32 %v402_v10, 0.0 }
  0x93   :  { %725 = vmatmul.msk.f32.gmra.mxu0 %vm97_vm1, %v41_v5 }
  0x94   :  { %v549_v21 = vmax.f32 %v450_v13, 0.0 }
  0x96   :  { %771 = vmatmul.msk.f32.gmra.mxu3 %vm97_vm1, %v87_v8 }
  0x97   :  { %v404_v11 = vpop.f32.mrf.mxu2 }
  0x98   :  { %v405_v12 = vadd.f32 %v1126_v9, %v404_v11  ;;  %v1132_v14 = vpop.f32.mrf.mxu0 }
  0x99   :  { %v377_v16 = vpop.f32.mrf.mxu1  ;;  %v452_v17 = vpop.f32.mrf.mxu3 }
  0x9a   :  { %v534_v19 = vmax.f32 %v405_v12, 0.0  ;;  %v453_v20 = vadd.f32 %v1126_v9, %v452_v17  ;;  %v378_v7 = vadd.f32 %v1126_v9, %v377_v16  ;;  %v375_v12 = vadd.f32 %v1126_v9, %v1117_v6 }
  0x9b   :  { %726 = vmatmul.msk.f32.gmra.mxu0 %vm97_vm1, %v42_v15 }
  0x9c   :  { %598 = vmatpush.msrb.mxu2 %v534_v19  ;;  %v550_v22 = vmax.f32 %v453_v20, 0.0  ;;  %v525_v13 = vmax.f32 %v378_v7, 0.0  ;;  %v524_v19 = vmax.f32 %v375_v12, 0.0 }
  0x9e   :  { %599 = vmatpush.msrb.mxu2 %v533_v18  ;;  %618 = vmatpush.msrb.mxu3 %v550_v22  ;;  %v372_v18 = vadd.f32 %v1126_v9, %v1105_v1 }
  0x9f   :  { %v1139_v23 = vpop.f32.mrf.mxu2 }
  0xa0   :  { %v1141_v24 = vpop.f32.mrf.mxu0  ;;  %619 = vmatpush.msrb.mxu3 %v549_v21  ;;  %v523_v16 = vmax.f32 %v372_v18, 0.0 }
  0xa1   :  { %v380_v26 = vpop.f32.mrf.mxu1  ;;  %v1146_v27 = vpop.f32.mrf.mxu3 }
  0xa2   :  { %v381_v3 = vadd.f32 %v1126_v9, %v380_v26 }
  0xa3   :  { %727 = vmatmul.msk.f32.gmra.mxu0 %vm97_vm1, %v43_v25 }
  0xa4   :  { %v526_v10 = vmax.f32 %v381_v3, 0.0 }
  0xa7   :  { %v1149_v28 = vpop.f32.mrf.mxu2 }
  0xa8   :  { %v1151_v29 = vpop.f32.mrf.mxu0 }
  0xa9   :  { %v383_v30 = vpop.f32.mrf.mxu1  ;;  %v1153_v31 = vpop.f32.mrf.mxu3 }
  0xaa   :  { %v384_v61 = vadd.f32 %v1126_v9, %v383_v30 }
  0xac   :  { %v527_v8 = vmax.f32 %v384_v61, 0.0 }
  0xaf   :  { %v1155_v32 = vpop.f32.mrf.mxu2 }
  0xb0   :  { %v1157_v33 = vpop.f32.mrf.mxu0 }
  0xb1   :  { %v386_v34 = vpop.f32.mrf.mxu1  ;;  %v1159_v35 = vpop.f32.mrf.mxu3 }
  0xb2   :  { %v387_v58 = vadd.f32 %v1126_v9, %v386_v34 }
  0xb4   :  { %v528_v5 = vmax.f32 %v387_v58, 0.0 }
  0xb7   :  { %v1161_v36 = vpop.f32.mrf.mxu2 }
  0xb8   :  { %v1163_v37 = vpop.f32.mrf.mxu0 }
  0xb9   :  { %v389_v38 = vpop.f32.mrf.mxu1  ;;  %v1165_v39 = vpop.f32.mrf.mxu3 }
  0xba   :  { %v390_v55 = vadd.f32 %v1126_v9, %v389_v38 }
  0xbc   :  { %v529_v62 = vmax.f32 %v390_v55, 0.0 }
  0xbf   :  { %v1167_v40 = vpop.f32.mrf.mxu2 }
  0xc0   :  { %v1169_v41 = vpop.f32.mrf.mxu0 }
  0xc1   :  { %v392_v42 = vpop.f32.mrf.mxu1  ;;  %v1171_v43 = vpop.f32.mrf.mxu3 }
  0xc2   :  { %v393_v53 = vadd.f32 %v1126_v9, %v392_v42 }
  0xc4   :  { %v530_v59 = vmax.f32 %v393_v53, 0.0 }
  0xc7   :  { %v1173_v44 = vpop.f32.mrf.mxu2 }
  0xc8   :  { %v1175_v45 = vpop.f32.mrf.mxu0 }
  0xc9   :  { %v395_v46 = vpop.f32.mrf.mxu1  ;;  %v1177_v47 = vpop.f32.mrf.mxu3 }
  0xca   :  { %v396_v49 = vadd.f32 %v1126_v9, %v395_v46 }
  0xcc   :  { %v531_v56 = vmax.f32 %v396_v49, 0.0 }
  0xcf   :  { %v1179_v48 = vpop.f32.mrf.mxu2 }
  0xd0   :  { %v1182_v50 = vpop.f32.mrf.mxu0 }
  0xd1   :  { %v398_v51 = vpop.f32.mrf.mxu1  ;;  %v1184_v52 = vpop.f32.mrf.mxu3 }
  0xd2   :  { %v399_v54 = vadd.f32 %v1126_v9, %v398_v51 }
  0xd4   :  { %v532_v57 = vmax.f32 %v399_v54, 0.0 }
  0xd6   :  { %600 = vmatpush.msrb.mxu2 %v532_v57 }
  0xd7   :  { %v1190_v60 = vpop.f32.mrf.mxu2 }
  0xd8   :  { %601 = vmatpush.msrb.mxu2 %v531_v56  ;;  %v341_v0 = vpop.f32.mrf.mxu0 }
  0xd9   :  { %v1193_v2 = vpop.f32.mrf.mxu3  ;;  %v342_v7 = vadd.f32 %v1126_v9, %v341_v0 }
  0xda   :  { %602 = vmatpush.msrb.mxu2 %v530_v59 }
  0xdc   :  { %603 = vmatpush.msrb.mxu2 %v529_v62 }
  0xde   :  { %604 = vmatpush.msrb.mxu2 %v528_v5 }
  0xdf   :  { %v431_v11 = vpop.f32.mrf.mxu2 }
  0xe0   :  { %605 = vmatpush.msrb.mxu2 %v527_v8  ;;  %v344_v15 = vpop.f32.mrf.mxu0 }
  0xe1   :  { %v1199_v17 = vpop.f32.mrf.mxu3  ;;  %v345_v58 = vadd.f32 %v1126_v9, %v344_v15  ;;  %v339_v15 = vadd.f32 %v1126_v9, %v1182_v50  ;;  %v567_v50 = vld [vmem:[%s1325_s3] sm:$0xff] }
  0xe2   :  { %606 = vmatpush.msrb.mxu2 %v526_v10  ;;  %569 = vst [vmem:[#allocation1] ss:$4 sm:$0xff] %v567_v50 }
  0xe3   :  { %v514_v18 = vmax.f32 %v345_v58, 0.0 }
  0xe4   :  { %607 = vmatpush.msrb.mxu2 %v525_v13 }
  0xe6   :  { %608 = vmatpush.msrb.mxu2 %v524_v19 }
  0xe7   :  { %v434_v20 = vpop.f32.mrf.mxu2 }
  0xe8   :  { %609 = vmatpush.msrb.mxu2 %v523_v16  ;;  %v347_v21 = vpop.f32.mrf.mxu0  ;;  %v435_v0 = vadd.f32 %v1126_v9, %v434_v20 }
  0xe9   :  { %v1203_v22 = vpop.f32.mrf.mxu3  ;;  %v348_v55 = vadd.f32 %v1126_v9, %v347_v21  ;;  %v336_v21 = vadd.f32 %v1126_v9, %v1175_v45  ;;  %v330_v45 = vadd.f32 %v1126_v9, %v1163_v37  ;;  %v324_v37 = vadd.f32 %v1126_v9, %v1151_v29  ;;  %v570_v50 = vld.sshfl [vmem:[#allocation1] sm:$0xff pattern:$0x73625140] }
  0xea   :  { %v318_v29 = vadd.f32 %v1126_v9, %v1132_v14 }
  0xeb   :  { %v515_v8 = vmax.f32 %v348_v55, 0.0  ;;  %v511_v20 = vmax.f32 %v336_v21, 0.0 }
  0xef   :  { %v437_v25 = vpop.f32.mrf.mxu2 }
  0xf0   :  { %v350_v6 = vpop.f32.mrf.mxu0  ;;  %v438_v19 = vadd.f32 %v1126_v9, %v437_v25  ;;  %v432_v25 = vadd.f32 %v1126_v9, %v431_v11 }
  0xf1   :  { %v1205_v26 = vpop.f32.mrf.mxu3  ;;  %v351_v53 = vadd.f32 %v1126_v9, %v350_v6  ;;  %v513_v6 = vmax.f32 %v342_v7, 0.0 }
  0xf2   :  { %v543_v55 = vmax.f32 %v432_v25, 0.0 }
  0xf3   :  { %v516_v59 = vmax.f32 %v351_v53, 0.0  ;;  %v327_v53 = vadd.f32 %v1126_v9, %v1157_v33  ;;  %v321_v33 = vadd.f32 %v1126_v9, %v1141_v24  ;;  %v315_v24 = vadd.f32 %v1126_v9, %v1112_v4 }
  0xf5   :  { %v508_v58 = vmax.f32 %v327_v53, 0.0  ;;  %v504_v4 = vmax.f32 %v315_v24, 0.0 }
  0xf7   :  { %v440_v30 = vpop.f32.mrf.mxu2 }
  0xf8   :  { %v353_v34 = vpop.f32.mrf.mxu0  ;;  %v441_v62 = vadd.f32 %v1126_v9, %v440_v30  ;;  %v333_v30 = vadd.f32 %v1126_v9, %v1169_v41  ;;  %v429_v41 = vadd.f32 %v1126_v9, %v1190_v60  ;;  %v423_v60 = vadd.f32 %v1126_v9, %v1173_v44 }
  0xf9   :  { %v1207_v38 = vpop.f32.mrf.mxu3  ;;  %v354_v46 = vadd.f32 %v1126_v9, %v353_v34  ;;  %v512_v34 = vmax.f32 %v339_v15, 0.0  ;;  %v417_v44 = vadd.f32 %v1126_v9, %v1161_v36  ;;  %v505_v15 = vmax.f32 %v318_v29, 0.0 }
  0xfa   :  { %v546_v16 = vmax.f32 %v441_v62, 0.0  ;;  %v510_v11 = vmax.f32 %v333_v30, 0.0  ;;  %v507_v62 = vmax.f32 %v324_v37, 0.0  ;;  %v540_v7 = vmax.f32 %v423_v60, 0.0 }
  0xfb   :  { %v517_v56 = vmax.f32 %v354_v46, 0.0  ;;  %v411_v36 = vadd.f32 %v1126_v9, %v1149_v28 }
  0xfd   :  { %v536_v28 = vmax.f32 %v411_v36, 0.0 }
  0xff   :  { %v443_v42 = vpop.f32.mrf.mxu2 }
 0x100   :  { %v356_v1 = vpop.f32.mrf.mxu0  ;;  %v444_v57 = vadd.f32 %v1126_v9, %v443_v42  ;;  %v545_v42 = vmax.f32 %v438_v19, 0.0 }
 0x101   :  { %v357_v49 = vadd.f32 %v1126_v9, %v356_v1  ;;  %v1211_v51 = vpop.f32.mrf.mxu3 }
 0x102   :  { %v547_v12 = vmax.f32 %v444_v57, 0.0  ;;  %v542_v57 = vmax.f32 %v429_v41, 0.0  ;;  %v572_v41 = vld.sshfl [vmem:[#allocation1 + $0x10] sm:$0xff pattern:$0x73625140] }
 0x103   :  { %v518_v54 = vmax.f32 %v357_v49, 0.0  ;;  %v544_v49 = vmax.f32 %v435_v0, 0.0 }
 0x105   :  { %578 = vmatpush.msrb.mxu1 %v518_v54  ;;  %v426_v54 = vadd.f32 %v1126_v9, %v1179_v48  ;;  %v420_v48 = vadd.f32 %v1126_v9, %v1167_v40  ;;  %v414_v40 = vadd.f32 %v1126_v9, %v1155_v32  ;;  %v408_v32 = vadd.f32 %v1126_v9, %v1139_v23 }
 0x107   :  { %v446_v61 = vpop.f32.mrf.mxu2  ;;  %579 = vmatpush.msrb.mxu1 %v517_v56  ;;  %v509_v56 = vmax.f32 %v330_v45, 0.0  ;;  %v535_v45 = vmax.f32 %v408_v32, 0.0 }
 0x108   :  { %v447_v3 = vadd.f32 %v1126_v9, %v446_v61  ;;  %v1219_v5 = vpop.f32.mrf.mxu0 }
 0x109   :  { %580 = vmatpush.msrb.mxu1 %v516_v59  ;;  %v1222_v10 = vpop.f32.mrf.mxu3  ;;  %v541_v59 = vmax.f32 %v426_v54, 0.0 }
 0x10a   :  { %v548_v13 = vmax.f32 %v447_v3, 0.0 }
 0x10b   :  { %581 = vmatpush.msrb.mxu1 %v515_v8  ;;  %v506_v8 = vmax.f32 %v321_v33, 0.0 }
 0x10c   :  { %620 = vmatpush.msrb.mxu3 %v548_v13  ;;  %v312_v13 = vadd.f32 %v1126_v9, %v1100_v63 }
 0x10d   :  { %582 = vmatpush.msrb.mxu1 %v514_v18  ;;  %v538_v18 = vmax.f32 %v417_v44, 0.0  ;;  %v573_v44 = vld.sshfl [vmem:[#allocation1 + $0x18] sm:$0xff pattern:$0x73625140] }
 0x10e   :  { %621 = vmatpush.msrb.mxu3 %v547_v12  ;;  %v539_v12 = vmax.f32 %v420_v48, 0.0  ;;  %v503_v0 = vmax.f32 %v312_v13, 0.0 }
 0x10f   :  { %583 = vmatpush.msrb.mxu1 %v513_v6 }
 0x110   :  { %622 = vmatpush.msrb.mxu3 %v546_v16  ;;  %v1236_v1 = vpop.f32.mrf.mxu0  ;;  %v537_v16 = vmax.f32 %v414_v40, 0.0 }
 0x111   :  { %584 = vmatpush.msrb.mxu1 %v512_v34  ;;  %v497_v46 = vpop.f32.mrf.mxu3  ;;  %v495_v34 = vadd.f32 %v1126_v9, %v1222_v10  ;;  %v363_v23 = vadd.f32 %v1126_v9, %v1236_v1  ;;  %v489_v10 = vadd.f32 %v1126_v9, %v1207_v38  ;;  %v480_v38 = vadd.f32 %v1126_v9, %v1199_v17 }
 0x112   :  { %623 = vmatpush.msrb.mxu3 %v545_v42  ;;  %v498_v21 = vadd.f32 %v1126_v9, %v497_v46  ;;  %v468_v17 = vadd.f32 %v1126_v9, %v1171_v43  ;;  %v456_v43 = vadd.f32 %v1126_v9, %v1146_v27  ;;  %v658_v27 = vld [vmem:[%s1326_s4] sm:$0xff] }
 0x113   :  { %585 = vmatpush.msrb.mxu1 %v511_v20  ;;  %v492_v20 = vadd.f32 %v1126_v9, %v1211_v51  ;;  %v564_v53 = vmax.f32 %v495_v34, 0.0  ;;  %v520_v1 = vmax.f32 %v363_v23, 0.0  ;;  %v486_v51 = vadd.f32 %v1126_v9, %v1205_v26 }
 0x114   :  { %624 = vmatpush.msrb.mxu3 %v544_v49  ;;  %v565_v46 = vmax.f32 %v498_v21, 0.0  ;;  %v360_v49 = vadd.f32 %v1126_v9, %v1219_v5  ;;  %v483_v5 = vadd.f32 %v1126_v9, %v1203_v22  ;;  %v562_v37 = vmax.f32 %v489_v10, 0.0 }
 0x115   :  { %586 = vmatpush.msrb.mxu1 %v510_v11  ;;  %v563_v11 = vmax.f32 %v492_v20, 0.0  ;;  %v477_v26 = vadd.f32 %v1126_v9, %v1193_v2  ;;  %v559_v33 = vmax.f32 %v480_v38, 0.0  ;;  %v471_v22 = vadd.f32 %v1126_v9, %v1177_v47 }
 0x116   :  { %625 = vmatpush.msrb.mxu3 %v543_v55  ;;  %v519_v54 = vmax.f32 %v360_v49, 0.0  ;;  %v571_v55 = vld.sshfl [vmem:[#allocation1 + $0x8] sm:$0xff pattern:$0x73625140]  ;;  %v560_v60 = vmax.f32 %v483_v5, 0.0  ;;  %v465_v2 = vadd.f32 %v1126_v9, %v1165_v39  ;;  %v459_v47 = vadd.f32 %v1126_v9, %v1153_v31  ;;  %v660_v31 = vld [vmem:[%s1326_s4 + $0x10] sm:$0xff] }
 0x117   :  { %587 = vmatpush.msrb.mxu1 %v509_v56  ;;  %v561_v56 = vmax.f32 %v486_v51, 0.0  ;;  %v551_v39 = vmax.f32 %v456_v43, 0.0 }
 0x118   :  { %626 = vmatpush.msrb.mxu3 %v542_v57  ;;  %v365_v61 = vpop.f32.mrf.mxu0  ;;  %v474_v57 = vadd.f32 %v1126_v9, %v1184_v52  ;;  %v462_v52 = vadd.f32 %v1126_v9, %v1159_v35  ;;  %v554_v29 = vmax.f32 %v465_v2, 0.0  ;;  %v661_v35 = vld [vmem:[%s1326_s4 + $0x18] sm:$0xff] }
 0x119   :  { %588 = vmatpush.msrb.mxu1 %v508_v58  ;;  %v500_v3 = vpop.f32.mrf.mxu3  ;;  %v366_v19 = vadd.f32 %v1126_v9, %v365_v61  ;;  %v558_v58 = vmax.f32 %v477_v26, 0.0  ;;  %v555_v61 = vmax.f32 %v468_v17, 0.0 }
 0x11a   :  { %627 = vmatpush.msrb.mxu3 %v541_v59  ;;  %v501_v14 = vadd.f32 %v1126_v9, %v500_v3  ;;  %v557_v48 = vmax.f32 %v474_v57, 0.0  ;;  %v556_v59 = vmax.f32 %v471_v22, 0.0  ;;  %v552_v3 = vmax.f32 %v459_v47, 0.0 }
 0x11b   :  { %589 = vmatpush.msrb.mxu1 %v507_v62  ;;  %v521_v25 = vmax.f32 %v366_v19, 0.0  ;;  %v553_v62 = vmax.f32 %v462_v52, 0.0 }
 0x11c   :  { %628 = vmatpush.msrb.mxu3 %v540_v7  ;;  %v566_v6 = vmax.f32 %v501_v14, 0.0 }
 0x11d   :  { %590 = vmatpush.msrb.mxu1 %v506_v8 }
 0x11e   :  { %629 = vmatpush.msrb.mxu3 %v539_v12 }
 0x11f   :  { %591 = vmatpush.msrb.mxu1 %v505_v15  ;;  %v790_v15 = vld [vmem:[%s1327_s5] ss:$0 sm:$0xff] }
 0x120   :  { %630 = vmatpush.msrb.mxu3 %v538_v18  ;;  %v368_v63 = vpop.f32.mrf.mxu0 }
 0x121   :  { %592 = vmatpush.msrb.mxu1 %v504_v4  ;;  %v369_v30 = vadd.f32 %v1126_v9, %v368_v63  ;;  %v659_v9 = vld [vmem:[%s1326_s4 + $0x8] sm:$0xff]  ;;  %s698_s4 = sshll.u32 %s1328_s6, 4  ;;  %s699_s4 = int_to_ptr.hbm [resolvable:$true] %s698_s4 }
 0x122   :  { %631 = vmatpush.msrb.mxu3 %v537_v16 }
 0x123   :  { %593 = vmatpush.msrb.mxu1 %v503_v0  ;;  %v522_v42 = vmax.f32 %v369_v30, 0.0 }
 0x124   :  { %632 = vmatpush.msrb.mxu3 %v536_v28  ;;  %594 = vmatmul.f32.vlgmr.msrb.gmra.mxu1 %v570_v50 }
 0x125   :  { %638 = vmatpush.msra.mxu1 %v566_v6  ;;  %610 = vmatpush.msrb.mxu2 %v522_v42 }
 0x126   :  { %633 = vmatpush.msrb.mxu3 %v535_v45 }
 0x127   :  { %639 = vmatpush.msra.mxu1 %v565_v46  ;;  %611 = vmatpush.msrb.mxu2 %v521_v25 }
 0x128   :  { %634 = vmatmul.f32.vlgmr.msrb.gmra.mxu3 %v572_v41 }
 0x129   :  { %640 = vmatpush.msra.mxu1 %v564_v53  ;;  %612 = vmatpush.msrb.mxu2 %v520_v1 }
 0x12b   :  { %641 = vmatpush.msra.mxu1 %v563_v11  ;;  %613 = vmatpush.msrb.mxu2 %v519_v54 }
 0x12c   :  { %614 = vmatmul.f32.vlgmr.msrb.gmra.mxu2 %v571_v55 }
 0x12d   :  { %642 = vmatpush.msra.mxu1 %v562_v37  ;;  %682 = vmatpush.msra.mxu2 %v661_v35 }
 0x12f   :  { %643 = vmatpush.msra.mxu1 %v561_v56  ;;  %683 = vmatpush.msra.mxu2 %v660_v31 }
 0x131   :  { %644 = vmatpush.msra.mxu1 %v560_v60  ;;  %684 = vmatpush.msra.mxu2 %v659_v9 }
 0x133   :  { %645 = vmatpush.msra.mxu1 %v559_v33  ;;  %685 = vmatpush.msra.mxu2 %v658_v27 }
 0x135   :  { %646 = vmatpush.msra.mxu1 %v558_v58 }
 0x137   :  { %647 = vmatpush.msra.mxu1 %v557_v48 }
 0x139   :  { %648 = vmatpush.msra.mxu1 %v556_v59 }
 0x13b   :  { %649 = vmatpush.msra.mxu1 %v555_v61 }
 0x13d   :  { %650 = vmatpush.msra.mxu1 %v554_v29 }
 0x13f   :  { %651 = vmatpush.msra.mxu1 %v553_v62 }
 0x141   :  { %652 = vmatpush.msra.mxu1 %v552_v3 }
 0x143   :  { %653 = vmatpush.msra.mxu1 %v551_v39 }
 0x144   :  { %654 = vmatmul.f32.vlgmr.msra.gmra.mxu1 %v573_v44 }
 0x1a1   :  { %v595_v7 = vpop.f32.mrf.mxu1 }
 0x1ab   :  { %v635_v40 = vpop.f32.mrf.mxu3 }
 0x1af   :  { %v615_v24 = vpop.f32.mrf.mxu2 }
 0x1b0   :  { %v616_v8 = vadd.f32 %v615_v24, %v595_v7 }
 0x1b2   :  { %v636_v12 = vadd.f32 %v635_v40, %v616_v8 }
 0x1c1   :  { %v655_v14 = vpop.f32.mrf.mxu1 }
 0x1c2   :  { %v656_v13 = vadd.f32 %v655_v14, %v636_v12 }
 0x1c4   :  { %772 = vmatmul.msk.f32.vlgmr.msra.gmra.mxu2 %vm666_vm2, %v656_v13 }
 0x247   :  { %v687_v36 = vpop.f32.mrf.mxu2 }
 0x248   :  { %v688_v18 = vadd.f32 %v790_v15, %v687_v36 }
 0x24a   :  { %690 = vst [vmem:[#allocation2] sm:$0x3] %v688_v18 }
 0x24b   :  { %701 = dma.vmem_to_hbm [thread:$0]  %s697_s21, 32, %s699_s4, [#allocation3]  }
 0x24c   :  { %815 = dma.done.wait [#allocation3], 32  }
 0x24d   :  { %816 = vsyncadd [#allocation3], 4294967264 }
 0x24e   :  { %706 = vsyncpa [#allocation3], 1 }

</bundles_post_ra>
